<compile_context>
chip_gen: v5e
topology: v5e:2x2
jax: 0.10.0
libtpu: 0.0.40
codegen_flags: <defaults>
</compile_context>

<pallas_src>
import jax
import jax.numpy as jnp
from jax.experimental import pallas as pl
from jax.experimental.pallas import tpu as pltpu


def _latent_embed_concat_kernel(y_ref, z_ref, emb_ref, out_ref):
    """Per-batch-tile: one-hot MXU gather, L2 normalize, concat store.

    y_ref   : VMEM int32 [TB, 1]               -- class labels (column vector)
    z_ref   : VMEM       [TB, z_dim]           -- latent codes
    emb_ref : VMEM       [nlabels, embed_dim]  -- embedding table (resident)
    out_ref : VMEM       [TB, z_dim+embed_dim]
    """
    tb, z_dim = z_ref.shape
    nlabels, embed_dim = emb_ref.shape

    # --- gather: one-hot matmul on the MXU ---
    labels = y_ref[...]                                              # [TB, 1] int32
    iota = jax.lax.broadcasted_iota(jnp.int32, (tb, nlabels), 1)     # [TB, nlabels]
    onehot = (iota == labels).astype(emb_ref.dtype)                  # [TB, nlabels]
    g = jnp.dot(onehot, emb_ref[...],
                preferred_element_type=jnp.float32)                  # [TB, embed_dim] f32

    # --- L2 normalize per row (torch.norm(p=2, dim=1, keepdim=True)) ---
    # No epsilon: matches PyTorch's raw divide (an all-zero row -> NaN/Inf
    # there too).  Ragged-padded rows may produce NaN here; their output
    # store is masked by Pallas so this is harmless.
    inv_norm = jax.lax.rsqrt(jnp.sum(g * g, axis=1, keepdims=True))  # [TB, 1]
    yembed = (g * inv_norm).astype(out_ref.dtype)                    # [TB, embed_dim]

    # --- concat([z, yembed], dim=1) in the native output dtype ---
    if z_dim % 128 == 0:
        # Lane-aligned split: two stores, no cross-lane packing.
        out_ref[:, :z_dim] = z_ref[...]
        out_ref[:, z_dim:z_dim + embed_dim] = yembed
    else:
        out_ref[...] = jnp.concatenate([z_ref[...], yembed], axis=1)


def _round_up(x, m):
    return (x + m - 1) // m * m


def _pick_batch_tile(B, per_row_bytes, resident_bytes, budget_bytes):
    """Largest batch tile (multiple of 8) that fits the VMEM budget and keeps
    the grid >= 2 steps for B > 8 (megacore sharding / pipeline overlap)."""
    if B <= 8:
        return B  # single full-extent block (block dim == array dim)
    tb = 8
    for cand in (16, 32, 64, 128, 256, 512, 1024, 2048, 4096):
        if cand >= B:  # keep grid = cdiv(B, tb) >= 2
            break
        if resident_bytes + cand * per_row_bytes > budget_bytes:
            break
        tb = cand
    return tb


def latent_embedding_concat(z, y, embedding_weight):
    """z: [B, z_dim], y: [B] int (labels), embedding_weight: [nlabels, embed_dim]."""
    assert z.shape[0] == y.shape[0]
    B, z_dim = z.shape
    nlabels, embed_dim = embedding_weight.shape
    out_dim = z_dim + embed_dim

    # Labels as an int32 column so the one-hot is built with a vector compare.
    y_col = y.astype(jnp.int32).reshape(B, 1)

    # --- VMEM budgeting (conservative: must also fit v7x's 64 MiB VMEM) ---
    z_isz = jnp.dtype(z.dtype).itemsize
    emb_isz = jnp.dtype(embedding_weight.dtype).itemsize
    table_vmem = _round_up(nlabels, 8) * _round_up(embed_dim, 128) * emb_isz
    # per row, double-buffered: z tile + out tile + (tb,1) int32 y block
    # (padded to 128 lanes -> 512 B/row/buffer).
    per_row = 2 * (_round_up(z_dim, 128) * z_isz
                   + _round_up(out_dim, 128) * z_isz
                   + 128 * 4)
    budget = 28 * 1024 * 1024  # tiles + (up to 2x) table, leaves headroom on v7x

    tb = _pick_batch_tile(B, per_row, 2 * table_vmem, budget)
    grid = (pl.cdiv(B, tb),)

    est_vmem = 2 * table_vmem + tb * per_row + (2 << 20)
    vmem_limit = int(min(max(32 << 20, est_vmem), 64 << 20))

    # TODO(synk): for large nlabels (table not comfortably VMEM-resident, esp.
    # v7x's 64 MiB VMEM), keep the table in HBM (memory_space=pl.ANY), scalar-
    # prefetch y, and gather the needed rows with double-buffered
    # make_async_copy instead of the one-hot matmul.

    def build(single_buffer_table):
        table_kwargs = {}
        if single_buffer_table:
            # Constant index_map -> never re-fetched; no need to double-buffer.
            table_kwargs["pipeline_mode"] = pl.Buffered(1)
        return pl.pallas_call(
            _latent_embed_concat_kernel,
            out_shape=jax.ShapeDtypeStruct((B, out_dim), z.dtype),
            grid=grid,
            in_specs=[
                pl.BlockSpec((tb, 1), lambda i: (i, 0)),               # y labels
                pl.BlockSpec((tb, z_dim), lambda i: (i, 0)),           # z tile
                pl.BlockSpec((nlabels, embed_dim), lambda i: (0, 0),   # table
                             **table_kwargs),
            ],
            out_specs=pl.BlockSpec((tb, out_dim), lambda i: (i, 0)),
            compiler_params=pltpu.CompilerParams(
                dimension_semantics=("parallel",),
                vmem_limit_bytes=vmem_limit,
            ),
        )

    try:
        return build(True)(y_col, z, embedding_weight)
    except Exception:
        # Fallback for Pallas versions that reject Buffered(1): default
        # (double-buffered) table input. Same semantics, slightly more VMEM.
        return build(False)(y_col, z, embedding_weight)


def reference(z, y, embedding_weight):
    yembed = embedding_weight[y]                                   # [B, embed_dim]
    yembed = yembed / jnp.linalg.norm(yembed, axis=1, keepdims=True)
    return jnp.concatenate([z, yembed], axis=1)


if __name__ == "__main__":
    key = jax.random.PRNGKey(0)

    # --- case 1: module-sized small shapes (B=2) -> single full-extent block ---
    B, z_dim, nlabels, embed_dim = 2, 32, 10, 32
    kz, ky, kw, k2z, k2y, k2w = jax.random.split(key, 6)

    z = jax.random.normal(kz, (B, z_dim), dtype=jnp.float32)
    y = jax.random.randint(ky, (B,), 0, nlabels, dtype=jnp.int32)
    embedding_weight = jax.random.normal(kw, (nlabels, embed_dim), dtype=jnp.float32)

    out = jax.block_until_ready(latent_embedding_concat(z, y, embedding_weight))
    ref = reference(z, y, embedding_weight)
    assert out.shape == (B, z_dim + embed_dim), out.shape
    assert jnp.allclose(out, ref, atol=1e-5, rtol=1e-5), "mismatch vs reference (B=2)"

    # --- case 2: ragged batch (B=20, not a multiple of the tile) with
    # 128-aligned dims -> exercises cdiv masking + lane-aligned split stores ---
    B2, z_dim2, nlabels2, embed_dim2 = 20, 128, 24, 128
    z2 = jax.random.normal(k2z, (B2, z_dim2), dtype=jnp.float32)
    y2 = jax.random.randint(k2y, (B2,), 0, nlabels2, dtype=jnp.int32)
    w2 = jax.random.normal(k2w, (nlabels2, embed_dim2), dtype=jnp.float32)

    out2 = jax.block_until_ready(latent_embedding_concat(z2, y2, w2))
    ref2 = reference(z2, y2, w2)
    assert out2.shape == (B2, z_dim2 + embed_dim2), out2.shape
    assert jnp.allclose(out2, ref2, atol=1e-5, rtol=1e-5), "mismatch vs reference (B=20)"

    print("KERNEL_OK")
</pallas_src>

<mosaic_0001>
module attributes {stable_mosaic.version = 11 : i64} {
  func.func @_latent_embed_concat_kernel(%arg0: i32, %arg1: memref<2x1xi32, #tpu.memory_space<vmem>>, %arg2: memref<2x32xf32, #tpu.memory_space<vmem>>, %arg3: memref<10x32xf32, #tpu.memory_space<vmem>>, %arg4: memref<2x64xf32, #tpu.memory_space<vmem>>) attributes {dimension_semantics = [#tpu.dimension_semantics<parallel>], iteration_bounds = array<i64: 1>, scalar_prefetch = 0 : i64, scratch_operands = 0 : i64, tpu.core_type = #tpu.core_type<tc>, window_params = [{transform_indices = @transform_0, window_bounds = array<i64: 2, 1>}, {transform_indices = @transform_1, window_bounds = array<i64: 2, 32>}, {pipeline_mode = #tpu.pipeline_mode<synchronous>, transform_indices = @transform_2, window_bounds = array<i64: 10, 32>}, {transform_indices = @transform_3, window_bounds = array<i64: 2, 64>}]} {
    %c0 = arith.constant 0 : index
    %c0_0 = arith.constant 0 : index
    %0 = vector.load %arg1[%c0, %c0_0] : memref<2x1xi32, #tpu.memory_space<vmem>>, vector<2x1xi32>
    %1 = tpu.iota {dimensions = array<i32: 1>} : vector<2x10xi32>
    %2 = vector.broadcast %0 : vector<2x1xi32> to vector<2x10xi32>
    %3 = arith.cmpi eq, %1, %2 : vector<2x10xi32>
    %4 = arith.extui %3 : vector<2x10xi1> to vector<2x10xi32>
    %5 = arith.sitofp %4 : vector<2x10xi32> to vector<2x10xf32>
    %c0_1 = arith.constant 0 : index
    %c0_2 = arith.constant 0 : index
    %6 = vector.load %arg3[%c0_1, %c0_2] : memref<10x32xf32, #tpu.memory_space<vmem>>, vector<10x32xf32>
    %cst = arith.constant dense<0.000000e+00> : vector<2x32xf32>
    %7 = tpu.matmul %5, %6, %cst {dimension_numbers = #tpu.dot_dimension_numbers<[1], [0], [0], [1], [0, 0, 1, 1], [], []>} : vector<2x10xf32>, vector<10x32xf32>, vector<2x32xf32> -> vector<2x32xf32>
    %8 = arith.mulf %7, %7 : vector<2x32xf32>
    %cst_3 = arith.constant dense<0.000000e+00> : vector<2xf32>
    %9 = vector.multi_reduction <add>, %8, %cst_3 [1] : vector<2x32xf32> to vector<2xf32>
    %10 = vector.shape_cast %9 : vector<2xf32> to vector<2x1xf32>
    %11 = math.rsqrt %10 : vector<2x1xf32>
    %12 = vector.broadcast %11 : vector<2x1xf32> to vector<2x32xf32>
    %13 = arith.mulf %7, %12 : vector<2x32xf32>
    %c0_4 = arith.constant 0 : index
    %c0_5 = arith.constant 0 : index
    %14 = vector.load %arg2[%c0_4, %c0_5] : memref<2x32xf32, #tpu.memory_space<vmem>>, vector<2x32xf32>
    %15 = tpu.concatenate %14, %13 in 1 : vector<2x32xf32>, vector<2x32xf32> -> vector<2x64xf32>
    %c0_6 = arith.constant 0 : index
    %c0_7 = arith.constant 0 : index
    %16 = vector.load %arg4[%c0_6, %c0_7] : memref<2x64xf32, #tpu.memory_space<vmem>>, vector<2x64xf32>
    tpu.vector_store %arg4[%c0_6, %c0_7], %15 {strides = array<i32>} : memref<2x64xf32, #tpu.memory_space<vmem>>, vector<2x64xf32>,
    return
  }
  func.func @transform_0(%arg0: i32) -> (i32, i32) {
    %c0_i32 = arith.constant 0 : i32
    %c0_i32_0 = arith.constant 0 : i32
    return %arg0, %c0_i32 : i32, i32
  }
  func.func @transform_1(%arg0: i32) -> (i32, i32) {
    %c0_i32 = arith.constant 0 : i32
    %c0_i32_0 = arith.constant 0 : i32
    return %arg0, %c0_i32 : i32, i32
  }
  func.func @transform_2(%arg0: i32) -> (i32, i32) {
    %c0_i32 = arith.constant 0 : i32
    %c0_i32_0 = arith.constant 0 : i32
    %c0_i32_1 = arith.constant 0 : i32
    return %c0_i32, %c0_i32_0 : i32, i32
  }
  func.func @transform_3(%arg0: i32) -> (i32, i32) {
    %c0_i32 = arith.constant 0 : i32
    %c0_i32_0 = arith.constant 0 : i32
    return %arg0, %c0_i32 : i32, i32
  }
}

module attributes {stable_mosaic.version = 11 : i64} {
  func.func @_latent_embed_concat_kernel(%arg0: i32, %arg1: memref<2x1xi32, #tpu.memory_space<vmem>>, %arg2: memref<2x32xf32, #tpu.memory_space<vmem>>, %arg3: memref<10x32xf32, #tpu.memory_space<vmem>>, %arg4: memref<2x64xf32, #tpu.memory_space<vmem>>) attributes {dimension_semantics = [#tpu.dimension_semantics<parallel>], iteration_bounds = array<i64: 1>, scalar_prefetch = 0 : i64, scratch_operands = 0 : i64, tpu.core_type = #tpu.core_type<tc>, window_params = [{transform_indices = @transform_0, window_bounds = array<i64: 2, 1>}, {transform_indices = @transform_1, window_bounds = array<i64: 2, 32>}, {pipeline_mode = #tpu.pipeline_mode<synchronous>, transform_indices = @transform_2, window_bounds = array<i64: 10, 32>}, {transform_indices = @transform_3, window_bounds = array<i64: 2, 64>}]} {
    %c0 = arith.constant 0 : index
    %c0_0 = arith.constant 0 : index
    %0 = vector.load %arg1[%c0, %c0_0] : memref<2x1xi32, #tpu.memory_space<vmem>>, vector<2x1xi32>
    %1 = tpu.iota {dimensions = array<i32: 1>} : vector<2x10xi32>
    %2 = vector.broadcast %0 : vector<2x1xi32> to vector<2x10xi32>
    %3 = arith.cmpi eq, %1, %2 : vector<2x10xi32>
    %4 = arith.extui %3 : vector<2x10xi1> to vector<2x10xi32>
    %5 = arith.sitofp %4 : vector<2x10xi32> to vector<2x10xf32>
    %c0_1 = arith.constant 0 : index
    %c0_2 = arith.constant 0 : index
    %6 = vector.load %arg3[%c0_1, %c0_2] : memref<10x32xf32, #tpu.memory_space<vmem>>, vector<10x32xf32>
    %cst = arith.constant dense<0.000000e+00> : vector<2x32xf32>
    %7 = tpu.matmul %5, %6, %cst {dimension_numbers = #tpu.dot_dimension_numbers<[1], [0], [0], [1], [0, 0, 1, 1], [], []>} : vector<2x10xf32>, vector<10x32xf32>, vector<2x32xf32> -> vector<2x32xf32>
    %8 = arith.mulf %7, %7 : vector<2x32xf32>
    %cst_3 = arith.constant dense<0.000000e+00> : vector<2xf32>
    %9 = vector.multi_reduction <add>, %8, %cst_3 [1] : vector<2x32xf32> to vector<2xf32>
    %10 = vector.shape_cast %9 : vector<2xf32> to vector<2x1xf32>
    %11 = math.rsqrt %10 : vector<2x1xf32>
    %12 = vector.broadcast %11 : vector<2x1xf32> to vector<2x32xf32>
    %13 = arith.mulf %7, %12 : vector<2x32xf32>
    %c0_4 = arith.constant 0 : index
    %c0_5 = arith.constant 0 : index
    %14 = vector.load %arg2[%c0_4, %c0_5] : memref<2x32xf32, #tpu.memory_space<vmem>>, vector<2x32xf32>
    %15 = tpu.concatenate %14, %13 in 1 : vector<2x32xf32>, vector<2x32xf32> -> vector<2x64xf32>
    %c0_6 = arith.constant 0 : index
    %c0_7 = arith.constant 0 : index
    %16 = vector.load %arg4[%c0_6, %c0_7] : memref<2x64xf32, #tpu.memory_space<vmem>>, vector<2x64xf32>
    tpu.vector_store %arg4[%c0_6, %c0_7], %15 {strides = array<i32>} : memref<2x64xf32, #tpu.memory_space<vmem>>, vector<2x64xf32>,
    return
  }
  func.func @transform_0(%arg0: i32) -> (i32, i32) {
    %c0_i32 = arith.constant 0 : i32
    %c0_i32_0 = arith.constant 0 : i32
    return %arg0, %c0_i32 : i32, i32
  }
  func.func @transform_1(%arg0: i32) -> (i32, i32) {
    %c0_i32 = arith.constant 0 : i32
    %c0_i32_0 = arith.constant 0 : i32
    return %arg0, %c0_i32 : i32, i32
  }
  func.func @transform_2(%arg0: i32) -> (i32, i32) {
    %c0_i32 = arith.constant 0 : i32
    %c0_i32_0 = arith.constant 0 : i32
    %c0_i32_1 = arith.constant 0 : i32
    return %c0_i32, %c0_i32_0 : i32, i32
  }
  func.func @transform_3(%arg0: i32) -> (i32, i32) {
    %c0_i32 = arith.constant 0 : i32
    %c0_i32_0 = arith.constant 0 : i32
    return %arg0, %c0_i32 : i32, i32
  }
}

</mosaic_0001>

<bundles_post_ra>
// kernel: tpu_custom_call.1
= control target key start
LH: loop header
LB: loop body
LE: loop exit
PB: predicated region body
PF: predicated region fallthrough
CT: control target
= control target key end

     0   :  { %8 = vsyncpa [#allocation3], 0  ;;  %s216_s0 = inlined_call_operand.vmem [shape: s32[2,1], index: 0, kind: input, shape index: {}]   ;;  %s217_s1 = inlined_call_operand.vmem [shape: f32[2,32], index: 1, kind: input, shape index: {}]   ;;  %s218_s2 = inlined_call_operand.hbm [shape: f32[10,32], index: 2, kind: input, shape index: {}]   ;;  %s219_s3 = inlined_call_operand.hbm [shape: f32[2,64], index: 3, kind: output, shape index: {}]  }
   0x1   :  { %9 = vsyncpa [#allocation4], 0  ;;  %s18_s14 = sshll.u32 %s218_s2, 4  ;;  %s177_s15 = smov [#allocation2]   ;;  %s19_s14 = int_to_ptr.hbm [resolvable:$true] %s18_s14 }
   0x2   :  { %s20_s16 = sshll.u32 %s177_s15, 4  ;;  %s178_s17 = smov 128   ;;  %s21_s16 = int_to_ptr.vmem [resolvable:$true] %s20_s16 }
   0x3   :  { %s179_s18 = smov 8  }
   0x4   :  { %26 = dma.hbm_to_vmem [thread:$0]  %s19_s14, 256, %s21_s16, [#allocation3], %s178_s17, %s178_s17, %s179_s18  }
   0x5   :  { %173 = dma.done.wait [#allocation3], 256  }
   0x6   :  { %174 = vsyncadd [#allocation3], 4294967040  ;;  %v180_v0 = vmov 0   ;;  %vm46_vm0 = vcmask 1041408   ;;  %v31_v1 = vld [vmem:[%s216_s0] sm:$0x3]  ;;  %v32_v4 = vlaneseq }
   0x7   :  { %122 = vset.pattern.permute.xlu0 %v180_v0  ;;  %v41_v2 = vld [vmem:[#allocation2 + $0x8] sm:$0x3]  ;;  %v40_v3 = vld [vmem:[#allocation2] sm:$0xff]  ;;  %vm42_vm1 = vcmask 80896   ;;  %v181_v7 = vmov 0.0   ;;  %vm71_vm3 = vcmask 254976  }
   0x8   :  { %35 = vperm.xlu0 %122, %v31_v1   ;;  %113 = vmatpush.msk.msra.mxu0 %vm46_vm0, %v41_v2  ;;  %v33_v5 = vand.u32 127, %v32_v4  ;;  %s182_s0 = smov 32   ;;  %s183_s2 = smov [#allocation5]   ;;  %v86_v21 = vld [vmem:[%s217_s1] sm:$0x3]  ;;  %vm91_vm7 = vcmask 261120  }
   0x9   :  { %s100_s21 = sshll.u32 %s183_s2, 4  ;;  %s102_s24 = sshll.u32 %s219_s3, 4  ;;  %vm93_vm8 = vcmask 517120   ;;  %s101_s21 = int_to_ptr.vmem [resolvable:$true] %s100_s21  ;;  %s103_s24 = int_to_ptr.hbm [resolvable:$true] %s102_s24 }
   0xa   :  { %65 = vmatpush.msra.mxu0 %v40_v3 }
  0x7a   :  { %v36_v6 = vpop.permute.xlu0 %35 }
  0x7b   :  { %vm37_vm2 = vcmp.eq.s32.totalorder %v33_v5, %v36_v6 }
  0x7c   :  { %v112_v8 = vsel %vm37_vm2, 1.0, %v181_v7 }
  0x7d   :  { %114 = vmatmul.msk.f32.vlgmr.msra.gmra.mxu0 %vm42_vm1, %v112_v8 }
  0xfa   :  { %v67_v9 = vpop.f32.mrf.mxu0 }
  0xfb   :  { %v70_v10 = vmul.f32 %v67_v9, %v67_v9 }
  0xfd   :  { %v72_v11 = vsel %vm71_vm3, %v70_v10, 0.0 }
  0xfe   :  { %73 = vadd.xlane.f32.xlu0 %v72_v11 }
 0x171   :  { %v74_v12 = vpop.xlane.xlu0 %73 }
 0x172   :  { %123 = vrsqrt.f32 %v74_v12  ;;  %vm81_vm5 = vweird.f32 %v74_v12 }
 0x178   :  { %v124_v13 = vpop.eup %123 }
 0x179   :  { %v76_v14 = vmul.f32 %v124_v13, %v74_v12  ;;  %vm82_vm4 = vweird.f32 %v124_v13 }
 0x17a   :  { %vm83_vm6 = vmor %vm81_vm5, %vm82_vm4 }
 0x17b   :  { %v77_v15 = vmul.f32 %v124_v13, %v76_v14 }
 0x17d   :  { %v78_v16 = vmul.f32 0.5, %v77_v15 }
 0x17f   :  { %v79_v17 = vsub.f32 1.5, %v78_v16 }
 0x181   :  { %v80_v18 = vmul.f32 %v124_v13, %v79_v17 }
 0x183   :  { %v84_v19 = vsel %vm83_vm6, %v124_v13, %v80_v18 }
 0x184   :  { %v85_v20 = vmul.f32 %v84_v19, %v67_v9 }
 0x186   :  { %88 = vrot.lane.b32.xlu1 %v85_v20, %s182_s0 }
 0x1f8   :  { %v89_v22 = vpop.permute.xlu1 %88 }
 0x1f9   :  { %v92_v23 = vsel %vm91_vm7, %v86_v21, %v89_v22 }
 0x1fa   :  { %94 = vst.msk [vmem:[#allocation5] sm:$0x3] %vm93_vm8, %v92_v23 }
 0x1fb   :  { %105 = dma.vmem_to_hbm [thread:$0]  %s101_s21, 32, %s103_s24, [#allocation4]  }
 0x1fc   :  { %175 = dma.done.wait [#allocation4], 32  }
 0x1fd   :  { %176 = vsyncadd [#allocation4], 4294967264 }
 0x1fe   :  { %110 = vsyncpa [#allocation3], 1 }
 0x1ff   :  { %111 = vsyncpa [#allocation4], 1 }

// kernel: tpu_custom_call.1
= control target key start
LH: loop header
LB: loop body
LE: loop exit
PB: predicated region body
PF: predicated region fallthrough
CT: control target
= control target key end

     0   :  { %8 = vsyncpa [#allocation3], 0  ;;  %s216_s0 = inlined_call_operand.vmem [shape: s32[2,1], index: 0, kind: input, shape index: {}]   ;;  %s217_s1 = inlined_call_operand.vmem [shape: f32[2,32], index: 1, kind: input, shape index: {}]   ;;  %s218_s2 = inlined_call_operand.hbm [shape: f32[10,32], index: 2, kind: input, shape index: {}]   ;;  %s219_s3 = inlined_call_operand.hbm [shape: f32[2,64], index: 3, kind: output, shape index: {}]  }
   0x1   :  { %9 = vsyncpa [#allocation4], 0  ;;  %s18_s14 = sshll.u32 %s218_s2, 4  ;;  %s177_s15 = smov [#allocation2]   ;;  %s19_s14 = int_to_ptr.hbm [resolvable:$true] %s18_s14 }
   0x2   :  { %s20_s16 = sshll.u32 %s177_s15, 4  ;;  %s178_s17 = smov 128   ;;  %s21_s16 = int_to_ptr.vmem [resolvable:$true] %s20_s16 }
   0x3   :  { %s179_s18 = smov 8  }
   0x4   :  { %26 = dma.hbm_to_vmem [thread:$0]  %s19_s14, 256, %s21_s16, [#allocation3], %s178_s17, %s178_s17, %s179_s18  }
   0x5   :  { %173 = dma.done.wait [#allocation3], 256  }
   0x6   :  { %174 = vsyncadd [#allocation3], 4294967040  ;;  %v180_v0 = vmov 0   ;;  %vm46_vm0 = vcmask 1041408   ;;  %v31_v1 = vld [vmem:[%s216_s0] sm:$0x3]  ;;  %v32_v4 = vlaneseq }
   0x7   :  { %122 = vset.pattern.permute.xlu0 %v180_v0  ;;  %v41_v2 = vld [vmem:[#allocation2 + $0x8] sm:$0x3]  ;;  %v40_v3 = vld [vmem:[#allocation2] sm:$0xff]  ;;  %vm42_vm1 = vcmask 80896   ;;  %v181_v7 = vmov 0.0   ;;  %vm71_vm3 = vcmask 254976  }
   0x8   :  { %35 = vperm.xlu0 %122, %v31_v1   ;;  %113 = vmatpush.msk.msra.mxu0 %vm46_vm0, %v41_v2  ;;  %v33_v5 = vand.u32 127, %v32_v4  ;;  %s182_s0 = smov 32   ;;  %s183_s2 = smov [#allocation5]   ;;  %v86_v21 = vld [vmem:[%s217_s1] sm:$0x3]  ;;  %vm91_vm7 = vcmask 261120  }
   0x9   :  { %s100_s21 = sshll.u32 %s183_s2, 4  ;;  %s102_s24 = sshll.u32 %s219_s3, 4  ;;  %vm93_vm8 = vcmask 517120   ;;  %s101_s21 = int_to_ptr.vmem [resolvable:$true] %s100_s21  ;;  %s103_s24 = int_to_ptr.hbm [resolvable:$true] %s102_s24 }
   0xa   :  { %65 = vmatpush.msra.mxu0 %v40_v3 }
  0x7a   :  { %v36_v6 = vpop.permute.xlu0 %35 }
  0x7b   :  { %vm37_vm2 = vcmp.eq.s32.totalorder %v33_v5, %v36_v6 }
  0x7c   :  { %v112_v8 = vsel %vm37_vm2, 1.0, %v181_v7 }
  0x7d   :  { %114 = vmatmul.msk.f32.vlgmr.msra.gmra.mxu0 %vm42_vm1, %v112_v8 }
  0xfa   :  { %v67_v9 = vpop.f32.mrf.mxu0 }
  0xfb   :  { %v70_v10 = vmul.f32 %v67_v9, %v67_v9 }
  0xfd   :  { %v72_v11 = vsel %vm71_vm3, %v70_v10, 0.0 }
  0xfe   :  { %73 = vadd.xlane.f32.xlu0 %v72_v11 }
 0x171   :  { %v74_v12 = vpop.xlane.xlu0 %73 }
 0x172   :  { %123 = vrsqrt.f32 %v74_v12  ;;  %vm81_vm5 = vweird.f32 %v74_v12 }
 0x178   :  { %v124_v13 = vpop.eup %123 }
 0x179   :  { %v76_v14 = vmul.f32 %v124_v13, %v74_v12  ;;  %vm82_vm4 = vweird.f32 %v124_v13 }
 0x17a   :  { %vm83_vm6 = vmor %vm81_vm5, %vm82_vm4 }
 0x17b   :  { %v77_v15 = vmul.f32 %v124_v13, %v76_v14 }
 0x17d   :  { %v78_v16 = vmul.f32 0.5, %v77_v15 }
 0x17f   :  { %v79_v17 = vsub.f32 1.5, %v78_v16 }
 0x181   :  { %v80_v18 = vmul.f32 %v124_v13, %v79_v17 }
 0x183   :  { %v84_v19 = vsel %vm83_vm6, %v124_v13, %v80_v18 }
 0x184   :  { %v85_v20 = vmul.f32 %v84_v19, %v67_v9 }
 0x186   :  { %88 = vrot.lane.b32.xlu1 %v85_v20, %s182_s0 }
 0x1f8   :  { %v89_v22 = vpop.permute.xlu1 %88 }
 0x1f9   :  { %v92_v23 = vsel %vm91_vm7, %v86_v21, %v89_v22 }
 0x1fa   :  { %94 = vst.msk [vmem:[#allocation5] sm:$0x3] %vm93_vm8, %v92_v23 }
 0x1fb   :  { %105 = dma.vmem_to_hbm [thread:$0]  %s101_s21, 32, %s103_s24, [#allocation4]  }
 0x1fc   :  { %175 = dma.done.wait [#allocation4], 32  }
 0x1fd   :  { %176 = vsyncadd [#allocation4], 4294967264 }
 0x1fe   :  { %110 = vsyncpa [#allocation3], 1 }
 0x1ff   :  { %111 = vsyncpa [#allocation4], 1 }

</bundles_post_ra>
